<compile_context>
chip_gen: v7x
topology: tpu7x:2x2x1
jax: 0.10.0
libtpu: 0.0.40
codegen_flags: <defaults>
</compile_context>

<pallas_src>
import jax
import jax.numpy as jnp
from jax.experimental import pallas as pl
from jax.experimental.pallas import tpu as pltpu

EPS = 1e-3          # nn.BatchNorm3d(in_chs, eps=0.001)
NEG_SLOPE = 0.01    # nn.LeakyReLU default negative_slope

_VMEM_LIMIT = 32 * 1024 * 1024   # safe on v5e/v6e/v7x


def _choose_lane_tile(s_total, c_total, itemsize):
    """Lane tile: multiple of 128, 128..2048, sized so double-buffered input +
    output blocks plus f32 temporaries stay well under the 32 MiB VMEM limit."""
    budget = 20 * 1024 * 1024
    # 2x double-buffered input + 2x double-buffered output + two f32 temporaries
    per_lane = c_total * (2 * itemsize + 2 * itemsize + 8)
    ts = budget // max(per_lane, 1)
    ts = max(128, min(2048, ts))
    ts = (ts // 128) * 128
    if s_total <= ts:
        return s_total           # single full-extent block (always legal)
    return ts


def _stats_kernel_factory(chs, ts, s_total):
    """Pass 1: accumulate per-(n, channel) sum and sum-of-squares."""
    k_inputs = len(chs)
    needs_mask = (s_total % ts) != 0

    def kernel(*refs):
        x_refs = refs[:k_inputs]
        sum_refs = refs[k_inputs:2 * k_inputs]
        sq_refs = refs[2 * k_inputs:3 * k_inputs]
        s_idx = pl.program_id(1)

        @pl.when(s_idx == 0)
        def _init():
            for k in range(k_inputs):
                sum_refs[k][...] = jnp.zeros_like(sum_refs[k])
                sq_refs[k][...] = jnp.zeros_like(sq_refs[k])

        if needs_mask:
            col = jax.lax.broadcasted_iota(jnp.int32, (1, 1, ts), 2)
            valid = (s_idx * ts + col) < s_total

        for k in range(k_inputs):
            xk = x_refs[k][...].astype(jnp.float32)      # (1, C_k, ts)
            if needs_mask:
                xk = jnp.where(valid, xk, 0.0)
            sum_refs[k][...] += jnp.sum(xk, axis=2, keepdims=True)
            sq_refs[k][...] += jnp.sum(xk * xk, axis=2, keepdims=True)

    return kernel


def _norm_kernel_factory(chs):
    """Pass 2: y = scale*x + shift, LeakyReLU; write each input's channel range
    directly into the concatenated output block (concat fused)."""
    k_inputs = len(chs)

    def kernel(*refs):
        x_refs = refs[:k_inputs]
        sc_refs = refs[k_inputs:2 * k_inputs]
        sh_refs = refs[2 * k_inputs:3 * k_inputs]
        o_ref = refs[3 * k_inputs]
        off = 0
        for k in range(k_inputs):
            ck = chs[k]
            xk = x_refs[k][...].astype(jnp.float32)       # (1, C_k, ts)
            y = xk * sc_refs[k][...] + sh_refs[k][...]    # folded affine (FMA-shaped)
            y = jnp.where(y >= 0, y, NEG_SLOPE * y)       # LeakyReLU
            o_ref[:, off:off + ck, :] = y.astype(o_ref.dtype)
            off += ck

    return kernel


def cat_bn_act(x, gamma, beta):
    """x: tuple of NCDHW arrays (concatenated on C) or a single NCDHW array."""
    if not isinstance(x, (tuple, list)):
        x = (x,)
    x = tuple(x)
    chs = tuple(int(t.shape[1]) for t in x)
    k_inputs = len(x)
    n_batch = int(x[0].shape[0])
    d_dim, h_dim, w_dim = (int(v) for v in x[0].shape[2:])
    s_total = d_dim * h_dim * w_dim
    c_total = sum(chs)
    out_dtype = x[0].dtype

    # Free, contiguous reshape only — no transpose, no concat.
    x3 = tuple(t.reshape(n_batch, c, s_total) for t, c in zip(x, chs))

    ts = _choose_lane_tile(s_total, c_total, jnp.dtype(out_dtype).itemsize)
    s_tiles = pl.cdiv(s_total, ts)
    grid = (n_batch, s_tiles)

    cp_stats = pltpu.CompilerParams(
        dimension_semantics=("parallel", "arbitrary"),
        vmem_limit_bytes=_VMEM_LIMIT)
    cp_norm = pltpu.CompilerParams(
        dimension_semantics=("parallel", "parallel"),
        vmem_limit_bytes=_VMEM_LIMIT)

    # ---------------- pass 1: streamed per-channel sum / sum-of-squares -----
    stats_out_shape = (
        tuple(jax.ShapeDtypeStruct((n_batch, c, 1), jnp.float32) for c in chs)
        + tuple(jax.ShapeDtypeStruct((n_batch, c, 1), jnp.float32) for c in chs))
    stats_in_specs = [pl.BlockSpec((1, c, ts), lambda n, s: (n, 0, s)) for c in chs]
    stats_out_specs = ([pl.BlockSpec((1, c, 1), lambda n, s: (n, 0, 0)) for c in chs]
                       + [pl.BlockSpec((1, c, 1), lambda n, s: (n, 0, 0)) for c in chs])

    stats = pl.pallas_call(
        _stats_kernel_factory(chs, ts, s_total),
        out_shape=stats_out_shape,
        grid=grid,
        in_specs=stats_in_specs,
        out_specs=stats_out_specs,
        compiler_params=cp_stats,
    )(*x3)
    sum_parts = stats[:k_inputs]
    sq_parts = stats[k_inputs:]

    # ---------------- tiny C-length finalize (plain JAX) --------------------
    sums = jnp.concatenate(
        [p.reshape(n_batch, c) for p, c in zip(sum_parts, chs)], axis=1)
    sqs = jnp.concatenate(
        [p.reshape(n_batch, c) for p, c in zip(sq_parts, chs)], axis=1)
    count = float(n_batch * s_total)
    mean = jnp.sum(sums, axis=0) / count                       # (C_total,)
    var = jnp.sum(sqs, axis=0) / count - mean * mean           # biased (training BN)
    var = jnp.maximum(var, 0.0)                                # guard cancellation
    inv_std = jax.lax.rsqrt(var + EPS)
    scale = gamma.astype(jnp.float32).reshape(-1) * inv_std
    shift = beta.astype(jnp.float32).reshape(-1) - mean * scale

    scale_parts, shift_parts, off = [], [], 0
    for c in chs:
        scale_parts.append(scale[off:off + c].reshape(1, c, 1))
        shift_parts.append(shift[off:off + c].reshape(1, c, 1))
        off += c

    # ---------------- pass 2: normalize + affine + LeakyReLU ----------------
    norm_in_specs = (
        [pl.BlockSpec((1, c, ts), lambda n, s: (n, 0, s)) for c in chs]
        + [pl.BlockSpec((1, c, 1), lambda n, s: (0, 0, 0)) for c in chs]
        + [pl.BlockSpec((1, c, 1), lambda n, s: (0, 0, 0)) for c in chs])

    out3 = pl.pallas_call(
        _norm_kernel_factory(chs),
        out_shape=jax.ShapeDtypeStruct((n_batch, c_total, s_total), out_dtype),
        grid=grid,
        in_specs=norm_in_specs,
        out_specs=pl.BlockSpec((1, c_total, ts), lambda n, s: (n, 0, s)),
        compiler_params=cp_norm,
    )(*x3, *scale_parts, *shift_parts)

    # Free reshape back to NCDHW.
    return out3.reshape(n_batch, c_total, d_dim, h_dim, w_dim)


def _reference(x, gamma, beta):
    if isinstance(x, tuple):
        x = jnp.concatenate(x, axis=1)
    xf = x.astype(jnp.float32)
    mean = jnp.mean(xf, axis=(0, 2, 3, 4), keepdims=True)
    var = jnp.mean((xf - mean) ** 2, axis=(0, 2, 3, 4), keepdims=True)
    y = (xf - mean) / jnp.sqrt(var + EPS)
    y = y * gamma.reshape(1, -1, 1, 1, 1) + beta.reshape(1, -1, 1, 1, 1)
    return jnp.where(y >= 0, y, NEG_SLOPE * y).astype(x.dtype)


if __name__ == "__main__":
    key = jax.random.PRNGKey(0)
    k0, k1, kg, kb = jax.random.split(key, 4)

    # Two feature maps concatenated along channels: in_chs = 2 + 2 = 4
    N, D, H, W = 2, 4, 8, 8
    x0 = jax.random.normal(k0, (N, 2, D, H, W), dtype=jnp.float32)
    x1 = jax.random.normal(k1, (N, 2, D, H, W), dtype=jnp.float32)
    in_chs = 4

    # Deterministic non-trivial affine params to exercise the affine path.
    gamma = 1.0 + 0.1 * jax.random.normal(kg, (in_chs,), dtype=jnp.float32)
    beta = 0.1 * jax.random.normal(kb, (in_chs,), dtype=jnp.float32)

    out = cat_bn_act((x0, x1), gamma, beta)
    out = jax.block_until_ready(out)

    ref = _reference((x0, x1), gamma, beta)
    assert out.shape == (N, in_chs, D, H, W), out.shape
    assert jnp.allclose(out, ref, atol=1e-4, rtol=1e-4), \
        float(jnp.max(jnp.abs(out - ref)))

    print("KERNEL_OK")
</pallas_src>

<mosaic_0001>
module attributes {stable_mosaic.version = 11 : i64} {
  func.func @kernel(%arg0: i32, %arg1: i32, %arg2: memref<1x2x256xf32, #tpu.memory_space<vmem>>, %arg3: memref<1x2x256xf32, #tpu.memory_space<vmem>>, %arg4: memref<1x2x1xf32, #tpu.memory_space<vmem>>, %arg5: memref<1x2x1xf32, #tpu.memory_space<vmem>>, %arg6: memref<1x2x1xf32, #tpu.memory_space<vmem>>, %arg7: memref<1x2x1xf32, #tpu.memory_space<vmem>>) attributes {dimension_semantics = [#tpu.dimension_semantics<parallel>, #tpu.dimension_semantics<arbitrary>], iteration_bounds = array<i64: 2, 1>, scalar_prefetch = 0 : i64, scratch_operands = 0 : i64, tpu.core_type = #tpu.core_type<tc>, window_params = [{transform_indices = @transform_0, window_bounds = array<i64: 1, 2, 256>}, {transform_indices = @transform_1, window_bounds = array<i64: 1, 2, 256>}, {transform_indices = @transform_2, window_bounds = array<i64: 1, 2, 1>}, {transform_indices = @transform_3, window_bounds = array<i64: 1, 2, 1>}, {transform_indices = @transform_4, window_bounds = array<i64: 1, 2, 1>}, {transform_indices = @transform_5, window_bounds = array<i64: 1, 2, 1>}]} {
    %c0_i32 = arith.constant 0 : i32
    %0 = arith.cmpi eq, %arg1, %c0_i32 : i32
    %1 = arith.extui %0 : i1 to i32
    %c0_i32_0 = arith.constant 0 : i32
    %2 = arith.cmpi ne, %1, %c0_i32_0 : i32
    scf.if %2 {
      %cst_33 = arith.constant 0.000000e+00 : f32
      %27 = vector.broadcast %cst_33 : f32 to vector<1x2x1xf32>
      %c0_34 = arith.constant 0 : index
      %c0_35 = arith.constant 0 : index
      %c0_36 = arith.constant 0 : index
      %28 = vector.load %arg4[%c0_34, %c0_35, %c0_36] : memref<1x2x1xf32, #tpu.memory_space<vmem>>, vector<1x2x1xf32>
      tpu.vector_store %arg4[%c0_34, %c0_35, %c0_36], %27 {strides = array<i32>} : memref<1x2x1xf32, #tpu.memory_space<vmem>>, vector<1x2x1xf32>,
      %cst_37 = arith.constant 0.000000e+00 : f32
      %29 = vector.broadcast %cst_37 : f32 to vector<1x2x1xf32>
      %c0_38 = arith.constant 0 : index
      %c0_39 = arith.constant 0 : index
      %c0_40 = arith.constant 0 : index
      %30 = vector.load %arg6[%c0_38, %c0_39, %c0_40] : memref<1x2x1xf32, #tpu.memory_space<vmem>>, vector<1x2x1xf32>
      tpu.vector_store %arg6[%c0_38, %c0_39, %c0_40], %29 {strides = array<i32>} : memref<1x2x1xf32, #tpu.memory_space<vmem>>, vector<1x2x1xf32>,
      %cst_41 = arith.constant 0.000000e+00 : f32
      %31 = vector.broadcast %cst_41 : f32 to vector<1x2x1xf32>
      %c0_42 = arith.constant 0 : index
      %c0_43 = arith.constant 0 : index
      %c0_44 = arith.constant 0 : index
      %32 = vector.load %arg5[%c0_42, %c0_43, %c0_44] : memref<1x2x1xf32, #tpu.memory_space<vmem>>, vector<1x2x1xf32>
      tpu.vector_store %arg5[%c0_42, %c0_43, %c0_44], %31 {strides = array<i32>} : memref<1x2x1xf32, #tpu.memory_space<vmem>>, vector<1x2x1xf32>,
      %cst_45 = arith.constant 0.000000e+00 : f32
      %33 = vector.broadcast %cst_45 : f32 to vector<1x2x1xf32>
      %c0_46 = arith.constant 0 : index
      %c0_47 = arith.constant 0 : index
      %c0_48 = arith.constant 0 : index
      %34 = vector.load %arg7[%c0_46, %c0_47, %c0_48] : memref<1x2x1xf32, #tpu.memory_space<vmem>>, vector<1x2x1xf32>
      tpu.vector_store %arg7[%c0_46, %c0_47, %c0_48], %33 {strides = array<i32>} : memref<1x2x1xf32, #tpu.memory_space<vmem>>, vector<1x2x1xf32>,
    } else {
    }
    %c0 = arith.constant 0 : index
    %c0_1 = arith.constant 0 : index
    %c0_2 = arith.constant 0 : index
    %3 = vector.load %arg2[%c0, %c0_1, %c0_2] : memref<1x2x256xf32, #tpu.memory_space<vmem>>, vector<1x2x256xf32>
    %c0_3 = arith.constant 0 : index
    %c0_4 = arith.constant 0 : index
    %c0_5 = arith.constant 0 : index
    %4 = vector.load %arg4[%c0_3, %c0_4, %c0_5] : memref<1x2x1xf32, #tpu.memory_space<vmem>>, vector<1x2x1xf32>
    %cst = arith.constant dense<0.000000e+00> : vector<1x2xf32>
    %5 = vector.multi_reduction <add>, %3, %cst [2] : vector<1x2x256xf32> to vector<1x2xf32>
    %6 = vector.shape_cast %5 : vector<1x2xf32> to vector<1x2x1xf32>
    %7 = arith.addf %4, %6 : vector<1x2x1xf32>
    %c0_6 = arith.constant 0 : index
    %c0_7 = arith.constant 0 : index
    %c0_8 = arith.constant 0 : index
    %8 = vector.load %arg4[%c0_6, %c0_7, %c0_8] : memref<1x2x1xf32, #tpu.memory_space<vmem>>, vector<1x2x1xf32>
    tpu.vector_store %arg4[%c0_6, %c0_7, %c0_8], %7 {strides = array<i32>} : memref<1x2x1xf32, #tpu.memory_space<vmem>>, vector<1x2x1xf32>,
    %c0_9 = arith.constant 0 : index
    %c0_10 = arith.constant 0 : index
    %c0_11 = arith.constant 0 : index
    %9 = vector.load %arg6[%c0_9, %c0_10, %c0_11] : memref<1x2x1xf32, #tpu.memory_space<vmem>>, vector<1x2x1xf32>
    %10 = arith.mulf %3, %3 : vector<1x2x256xf32>
    %cst_12 = arith.constant dense<0.000000e+00> : vector<1x2xf32>
    %11 = vector.multi_reduction <add>, %10, %cst_12 [2] : vector<1x2x256xf32> to vector<1x2xf32>
    %12 = vector.shape_cast %11 : vector<1x2xf32> to vector<1x2x1xf32>
    %13 = arith.addf %9, %12 : vector<1x2x1xf32>
    %c0_13 = arith.constant 0 : index
    %c0_14 = arith.constant 0 : index
    %c0_15 = arith.constant 0 : index
    %14 = vector.load %arg6[%c0_13, %c0_14, %c0_15] : memref<1x2x1xf32, #tpu.memory_space<vmem>>, vector<1x2x1xf32>
    tpu.vector_store %arg6[%c0_13, %c0_14, %c0_15], %13 {strides = array<i32>} : memref<1x2x1xf32, #tpu.memory_space<vmem>>, vector<1x2x1xf32>,
    %c0_16 = arith.constant 0 : index
    %c0_17 = arith.constant 0 : index
    %c0_18 = arith.constant 0 : index
    %15 = vector.load %arg3[%c0_16, %c0_17, %c0_18] : memref<1x2x256xf32, #tpu.memory_space<vmem>>, vector<1x2x256xf32>
    %c0_19 = arith.constant 0 : index
    %c0_20 = arith.constant 0 : index
    %c0_21 = arith.constant 0 : index
    %16 = vector.load %arg5[%c0_19, %c0_20, %c0_21] : memref<1x2x1xf32, #tpu.memory_space<vmem>>, vector<1x2x1xf32>
    %cst_22 = arith.constant dense<0.000000e+00> : vector<1x2xf32>
    %17 = vector.multi_reduction <add>, %15, %cst_22 [2] : vector<1x2x256xf32> to vector<1x2xf32>
    %18 = vector.shape_cast %17 : vector<1x2xf32> to vector<1x2x1xf32>
    %19 = arith.addf %16, %18 : vector<1x2x1xf32>
    %c0_23 = arith.constant 0 : index
    %c0_24 = arith.constant 0 : index
    %c0_25 = arith.constant 0 : index
    %20 = vector.load %arg5[%c0_23, %c0_24, %c0_25] : memref<1x2x1xf32, #tpu.memory_space<vmem>>, vector<1x2x1xf32>
    tpu.vector_store %arg5[%c0_23, %c0_24, %c0_25], %19 {strides = array<i32>} : memref<1x2x1xf32, #tpu.memory_space<vmem>>, vector<1x2x1xf32>,
    %c0_26 = arith.constant 0 : index
    %c0_27 = arith.constant 0 : index
    %c0_28 = arith.constant 0 : index
    %21 = vector.load %arg7[%c0_26, %c0_27, %c0_28] : memref<1x2x1xf32, #tpu.memory_space<vmem>>, vector<1x2x1xf32>
    %22 = arith.mulf %15, %15 : vector<1x2x256xf32>
    %cst_29 = arith.constant dense<0.000000e+00> : vector<1x2xf32>
    %23 = vector.multi_reduction <add>, %22, %cst_29 [2] : vector<1x2x256xf32> to vector<1x2xf32>
    %24 = vector.shape_cast %23 : vector<1x2xf32> to vector<1x2x1xf32>
    %25 = arith.addf %21, %24 : vector<1x2x1xf32>
    %c0_30 = arith.constant 0 : index
    %c0_31 = arith.constant 0 : index
    %c0_32 = arith.constant 0 : index
    %26 = vector.load %arg7[%c0_30, %c0_31, %c0_32] : memref<1x2x1xf32, #tpu.memory_space<vmem>>, vector<1x2x1xf32>
    tpu.vector_store %arg7[%c0_30, %c0_31, %c0_32], %25 {strides = array<i32>} : memref<1x2x1xf32, #tpu.memory_space<vmem>>, vector<1x2x1xf32>,
    return
  }
  func.func @transform_0(%arg0: i32, %arg1: i32) -> (i32, i32, i32) {
    %c0_i32 = arith.constant 0 : i32
    %c0_i32_0 = arith.constant 0 : i32
    return %arg0, %c0_i32, %arg1 : i32, i32, i32
  }
  func.func @transform_1(%arg0: i32, %arg1: i32) -> (i32, i32, i32) {
    %c0_i32 = arith.constant 0 : i32
    %c0_i32_0 = arith.constant 0 : i32
    return %arg0, %c0_i32, %arg1 : i32, i32, i32
  }
  func.func @transform_2(%arg0: i32, %arg1: i32) -> (i32, i32, i32) {
    %c0_i32 = arith.constant 0 : i32
    %c0_i32_0 = arith.constant 0 : i32
    %c0_i32_1 = arith.constant 0 : i32
    return %arg0, %c0_i32, %c0_i32_0 : i32, i32, i32
  }
  func.func @transform_3(%arg0: i32, %arg1: i32) -> (i32, i32, i32) {
    %c0_i32 = arith.constant 0 : i32
    %c0_i32_0 = arith.constant 0 : i32
    %c0_i32_1 = arith.constant 0 : i32
    return %arg0, %c0_i32, %c0_i32_0 : i32, i32, i32
  }
  func.func @transform_4(%arg0: i32, %arg1: i32) -> (i32, i32, i32) {
    %c0_i32 = arith.constant 0 : i32
    %c0_i32_0 = arith.constant 0 : i32
    %c0_i32_1 = arith.constant 0 : i32
    return %arg0, %c0_i32, %c0_i32_0 : i32, i32, i32
  }
  func.func @transform_5(%arg0: i32, %arg1: i32) -> (i32, i32, i32) {
    %c0_i32 = arith.constant 0 : i32
    %c0_i32_0 = arith.constant 0 : i32
    %c0_i32_1 = arith.constant 0 : i32
    return %arg0, %c0_i32, %c0_i32_0 : i32, i32, i32
  }
}

</mosaic_0001>

<bundles_post_ra>
// kernel: tpu_custom_call.1
= control target key start
LH: loop header
LB: loop body
LE: loop exit
PB: predicated region body
PF: predicated region fallthrough
CT: control target
= control target key end

     0   :  { %11 = vsyncpa [#allocation3], 0  ;;  %s1059_s0 = inlined_call_operand.hbm [shape: f32[2,2,256], index: 0, kind: input, shape index: {}]   ;;  %s1060_s1 = inlined_call_operand.hbm [shape: f32[2,2,256], index: 1, kind: input, shape index: {}]   ;;  %s1061_s2 = inlined_call_operand.vmem [shape: f32[2,2,1], index: 2, kind: output, shape index: {0}]   ;;  %s1062_s3 = inlined_call_operand.vmem [shape: f32[2,2,1], index: 3, kind: output, shape index: {1}]   ;;  %s1063_s4 = inlined_call_operand.vmem [shape: f32[2,2,1], index: 4, kind: output, shape index: {2}]   ;;  %s1064_s5 = inlined_call_operand.vmem [shape: f32[2,2,1], index: 5, kind: output, shape index: {3}]  }
   0x1   :  { %13 = vsyncpa [#allocation3 + $0x1], 0 }
   0x2   :  { %14 = vsyncpa [#allocation5], 0 }
   0x3   :  { %16 = vsyncpa [#allocation5 + $0x1], 0  ;;  %s851_s18 = smov 0   ;;  %s853_s19 = smov 0  }
   0x4   :  { %s855_s20 = smov 0   ;;  %s857_s21 = smov 0  }
   0x5   :  { %s859_s22 = smov 0   ;;  %s861_s23 = smov 0  }
   0x6 LB: > { %s618_s24 = sadd.s32 4294967295, %s815_s23   ;;  %s34_s25 = sadd.s32 1, %s811_s22  ;;  %s815_s23 = sphi %s861_s23, %s22_s23   ;;  %s811_s22 = sphi %s859_s22, %s1078_s22   ;;  %s807_s21 = sphi %s857_s21, %s1077_s21   ;;  %s803_s20 = sphi %s855_s20, %s1076_s20   ;;  %s799_s19 = sphi %s853_s19, %s1075_s19   ;;  %s795_s18 = sphi %s851_s18, %s1074_s18  }
   0x7   : > { %p36_p0 = scmp.ge.s32.totalorder %s34_s25, 2  ;;  %s43_s26 = sadd.s32 1, %s803_s20 }
   0x8   : > { %p50_p1 = scmp.ne.s32.totalorder %s803_s20, %s799_s19  ;;  %p51_p2 = scmp.eq.s32.totalorder %s815_s23, 0 }
   0x9   : > { %s1080_s25 = smov (%p36_p0, %s34_s25), 0  ;;  %p56_p4 = scmp.ne.s32.totalorder %s799_s19, %s795_s18 }
   0xa   : > { %p887_p3 = por %p51_p2, %p50_p1  ;;  %s38_s28 = ssub.s32 %s811_s22, %s1080_s25 }
   0xb   : > { %p57_p5 = scmp.eq.s32.totalorder %s618_s24, 0  ;;  %p41_p6 = scmp.eq.s32.totalorder %s38_s28, 0 }
   0xc   : > { %p650_p8 = scmp.lt.s32.totalorder %s815_s23, 2  ;;  %s903_s6 = sand.u32 1, %s803_s20  }
   0xd   : > { %p894_p7 = por %p57_p5, %p56_p4  ;;  %s637_s7 = sshll.u32 %s811_s22, 6 }
   0xe   : > { %s900_s30 = scalar_select %p41_p6, %s803_s20, %s43_s26  }
   0xf   : > { %s1067_s29 = scalar_select %p894_p7, 1, 0 }
  0x10   : > { %s622_s8 = sshll.u32 %s903_s6, 2  ;;  %s912_s11 = scalar_lea.hbm %s1059_s0, %s637_s7 }
  0x11   : > { %s216_s12 = scalar_lea.vmem [#allocation2], %s622_s8  ;;  %p918_p9 = pnand %p650_p8, %p887_p3 }
  0x12   : > { %s226_s13 = sshll.u32 %s216_s12, 4  ;;  %s213_s15 = scalar_lea.sflag [#allocation3], %s903_s6  ;;  %s922_s13 = int_to_ptr.vmem [resolvable:$true] %s226_s13 }
  0x13   : > { %s701_s16 = scalar_lea.hbm %s912_s11, 64  ;;  %p703_p13 = pneg %p918_p9 }
  0x14   : > { %p702_p12 = scmp.ne.s32.totalorder %s912_s11, %s701_s16  ;;  %s706_s24 = scalar_lea.hbm %s1059_s0, 128 }
  0x15   : > { %p707_p2 = scmp.lt.u32.totalorder %s912_s11, %s1059_s0  ;;  %p708_p3 = scmp.lt.u32.totalorder %s706_s24, %s701_s16 }
  0x16   : > { %p704_p0 = pnand %p703_p13, %p702_p12  ;;  %p710_p5 = scmp.lt.u32.totalorder %s701_s16, %s912_s11 }
  0x17   : > { %p709_p4 = por %p708_p3, %p707_p2 }
  0x18   : > { %p705_p1 = pneg %p704_p0 }
  0x19   : > { %p711_p6 = por %p710_p5, %p709_p4 }
  0x1b   : > { %p712_p8 = pnand %p711_p6, %p705_p1 }
  0x1d   : > { %715 = shalt.err (!%p712_p8)
}
  0x1e   : > { %s716_s28 = scalar_lea.vmem %s922_s13, 64  ;;  %s817_s9 = smov [#allocation2]  }
  0x1f   : > { %p717_p12 = scmp.ne.s32.totalorder %s922_s13, %s716_s28  ;;  %s721_s10 = sshll.u32 %s817_s9, 4  ;;  %s722_s10 = int_to_ptr.vmem [resolvable:$false] %s721_s10 }
  0x20   : > { %s723_s12 = scalar_lea.vmem %s722_s10, 128  ;;  %p724_p11 = scmp.lt.s32.totalorder %s922_s13, %s722_s10 }
  0x21   : > { %p719_p0 = pnand %p717_p12, %p703_p13  ;;  %p725_p2 = scmp.lt.s32.totalorder %s723_s12, %s716_s28 }
  0x23   : > { %p720_p10 = pneg %p719_p0  ;;  %p726_p3 = por %p725_p2, %p724_p11 }
  0x25   : > { %p727_p4 = pnand %p726_p3, %p720_p10 }
  0x27   : > { %730 = shalt.err (!%p727_p4)
}
  0x28   : > { %646 = dma.hbm_to_vmem [thread:$0]  (!%p918_p9), %s912_s11, 64, %s922_s13, %s213_s15  }
  0x29   : > { %p1069_p1 = scmp.lt.s32.totalorder %s815_s23, 3  ;;  %p1070_p5 = scmp.ge.s32.totalorder %s815_s23, 1 }
  0x2a   : > { %s965_s24 = scalar_lea.hbm %s1060_s1, %s637_s7  ;;  %s237_s26 = scalar_lea.vmem [#allocation4], %s622_s8 }
  0x2b   : > { %p956_p6 = pnand %p1070_p5, %p1069_p1  ;;  %s247_s27 = sshll.u32 %s237_s26, 4  ;;  %s248_s27 = int_to_ptr.vmem [resolvable:$true] %s247_s27 }
  0x2c   : > { %s234_s11 = scalar_lea.sflag [#allocation5], %s903_s6  ;;  %s731_s13 = scalar_lea.hbm %s965_s24, 64 }
  0x2d   : > { %s1071_s16 = scalar_select %p956_p6, 1, 0 }
  0x2e   : > { %p732_p10 = scmp.ne.s32.totalorder %s965_s24, %s731_s13  ;;  %s736_s7 = scalar_lea.hbm %s1060_s1, 128 }
  0x2f   : > { %p737_p12 = scmp.lt.u32.totalorder %s965_s24, %s1060_s1  ;;  %p738_p0 = scmp.lt.u32.totalorder %s736_s7, %s731_s13 }
  0x30   : > { %p734_p11 = pnand %p732_p10, %p703_p13  ;;  %p740_p3 = scmp.lt.u32.totalorder %s731_s13, %s965_s24 }
  0x31   : > { %p739_p2 = por %p738_p0, %p737_p12 }
  0x32   : > { %p735_p8 = pneg %p734_p11 }
  0x33   : > { %p741_p4 = por %p740_p3, %p739_p2 }
  0x35   : > { %p742_p1 = pnand %p741_p4, %p735_p8 }
  0x37   : > { %745 = shalt.err (!%p742_p1)
}
  0x38   : > { %s746_s6 = scalar_lea.vmem %s248_s27, 64  ;;  %s818_s8 = smov [#allocation4]  }
  0x39   : > { %p747_p5 = scmp.ne.s32.totalorder %s248_s27, %s746_s6  ;;  %s751_s12 = sshll.u32 %s818_s8, 4  ;;  %s752_s12 = int_to_ptr.vmem [resolvable:$false] %s751_s12 }
  0x3a   : > { %s753_s17 = scalar_lea.vmem %s752_s12, 128  ;;  %p754_p7 = scmp.lt.s32.totalorder %s248_s27, %s752_s12 }
  0x3b   : > { %p749_p10 = pnand %p747_p5, %p703_p13  ;;  %p755_p6 = scmp.lt.s32.totalorder %s753_s17, %s746_s6 }
  0x3d   : > { %p750_p11 = pneg %p749_p10  ;;  %p756_p0 = por %p755_p6, %p754_p7 }
  0x3f   : > { %p757_p12 = pnand %p756_p0, %p750_p11 }
  0x41   : > { %760 = shalt.err (!%p757_p12)
}
  0x42   : > { %649 = dma.hbm_to_vmem [thread:$0]  (!%p918_p9), %s965_s24, 64, %s248_s27, %s234_s11  }
  0x43   : > { %p1072_p8 = scmp.ne.s32.totalorder %s1071_s16, 0 }
  0x44   : > { %s258_s18 = sand.u32 (!%p1072_p8), 1, %s799_s19   ;;  %p1073_p13 = scmp.ne.s32.totalorder (!%p1072_p8), %s1067_s29, 0 }
  0x45   : > { %256 = sbr.rel (%p1072_p8) target bundleno = 242 (0xf2), region = 28  ;;  %s629_s26 = sshll.u32 (!%p1072_p8), %s258_s18, 2 }
  0x46   : > { %s259_s13 = scalar_lea.sflag (!%p1072_p8), [#allocation3], %s258_s18  ;;  %s262_s15 = scalar_lea.vmem (!%p1072_p8), [#allocation2], %s629_s26 }
  0x4c   : > { %786 = dma.done.wait (%p1073_p13), %s259_s13, 64  }
  0x4d   : > { %788 = vsyncadd (%p1073_p13), %s259_s13, 4294967232  ;;  %s268_s28 = scalar_lea.sflag [#allocation5], %s258_s18  ;;  %s271_s7 = scalar_lea.vmem [#allocation4], %s629_s26 }
  0x4e   : > { %790 = dma.done.wait (%p1073_p13), %s268_s28, 64  }
  0x4f   : > { %792 = vsyncadd (%p1073_p13), %s268_s28, 4294967232  ;;  %v347_v0 = vlaneseq  ;;  %p316_p7 = scmp.lt.s32.totalorder %s807_s21, 1  ;;  %v819_v1 = vmov 1983009808   ;;  %vm336_vm0 = vcmask 1024   ;;  %v820_v6 = vmov 0.0  }
  0x50   : > { %v345_v2 = vunpack.c.l.s4 %v819_v1  ;;  %vm354_vm1 = vcmask 1041408   ;;  %v383_v7 = vld [vmem:[%s271_s7] sm:$0xf]  ;;  %v341_v8 = vld [vmem:[%s262_s15] sm:$0xf] }
  0x51   : > { %v348_v3 = vshrl.u32 %v347_v0, 7  ;;  %s1082_s21 = smov (!%p316_p7, %s807_s21), 1  ;;  %v404_v10 = vmul.f32 %v383_v7, %v383_v7  ;;  %v364_v12 = vmul.f32 %v341_v8, %v341_v8 }
  0x52   : > { %v346_v4 = vunpack.c.0.s8 %v345_v2  ;;  %s1002_s14 = sshll.u32 %s1082_s21, 1 }
  0x53   : > { %s1008_s27 = scalar_lea.vmem %s1062_s3, %s1002_s14  ;;  %s319_s11 = scalar_lea.vmem %s1061_s2, %s1002_s14 }
  0x54   : > { %v349_v5 = vsub.s32 %v346_v4, %v348_v3  ;;  %339 = vst.msk [vmem:[%s1008_s27] sm:$0x3] %vm336_vm0, %v820_v6  ;;  %337 = vst.msk [vmem:[%s319_s11] sm:$0x3] %vm336_vm0, %v820_v6  ;;  %s331_s6 = scalar_lea.vmem %s1064_s5, %s1002_s14  ;;  %s327_s17 = scalar_lea.vmem %s1063_s4, %s1002_s14 }
  0x55   : > { %340 = vst.msk [vmem:[%s331_s6] sm:$0x3] %vm336_vm0, %v820_v6  ;;  %338 = vst.msk [vmem:[%s327_s17] sm:$0x3] %vm336_vm0, %v820_v6 }
  0x56   : > { %v392_v9 = vrot.slane %v383_v7, %v349_v5  ;;  %v350_v11 = vrot.slane %v341_v8, %v349_v5  ;;  %v412_v17 = vrot.slane %v404_v10, %v349_v5  ;;  %v372_v18 = vrot.slane %v364_v12, %v349_v5 }
  0x58   : > { %v393_v13 = vcombine.high %v392_v9, %v392_v9  ;;  %v396_v14 = vsel %vm354_vm1, %v392_v9, 0.0  ;;  %v351_v15 = vcombine.high %v350_v11, %v350_v11  ;;  %v355_v16 = vsel %vm354_vm1, %v350_v11, 0.0 }
  0x59   : > { %v413_v23 = vcombine.high %v412_v17, %v412_v17  ;;  %v416_v24 = vsel %vm354_vm1, %v412_v17, 0.0  ;;  %v373_v25 = vcombine.high %v372_v18, %v372_v18  ;;  %v376_v26 = vsel %vm354_vm1, %v372_v18, 0.0 }
  0x5a   : > { %v397_v19 = vsel %vm354_vm1, %v393_v13, 0.0  ;;  %v356_v20 = vsel %vm354_vm1, %v351_v15, 0.0 }
  0x5b   : > { %v398_v21 = vadd.f32 %v397_v19, %v396_v14  ;;  %v357_v22 = vadd.f32 %v356_v20, %v355_v16  ;;  %v417_v27 = vsel %vm354_vm1, %v413_v23, 0.0  ;;  %v377_v29 = vsel %vm354_vm1, %v373_v25, 0.0  ;;  %v384_v31 = vld [vmem:[%s1008_s27] sm:$0x3] }
  0x5c   : > { %v418_v28 = vadd.f32 %v417_v27, %v416_v24  ;;  %v378_v30 = vadd.f32 %v377_v29, %v376_v26  ;;  %v342_v32 = vld [vmem:[%s319_s11] sm:$0x3] }
  0x5d   : > { %399 = vadd.xlane.f32.xlu1 %v398_v21  ;;  %358 = vadd.xlane.f32.xlu0 %v357_v22  ;;  %v403_v37 = vld [vmem:[%s331_s6] sm:$0x3] }
  0x5e   : > { %v363_v38 = vld [vmem:[%s327_s17] sm:$0x3] }
  0x61   : > { %419 = vadd.xlane.f32.xlu1 %v418_v28  ;;  %379 = vadd.xlane.f32.xlu0 %v378_v30 }
  0xea   : > { %v400_v33 = vpop.xlane.xlu1 %399  ;;  %v359_v34 = vpop.xlane.xlu0 %358 }
  0xeb   : > { %v401_v35 = vadd.f32 %v400_v33, %v384_v31  ;;  %v360_v36 = vadd.f32 %v359_v34, %v342_v32 }
  0xed   : > { %402 = vst.msk [vmem:[%s1008_s27] sm:$0x3] %vm336_vm0, %v401_v35  ;;  %362 = vst.msk [vmem:[%s319_s11] sm:$0x3] %vm336_vm0, %v360_v36 }
  0xee   : > { %v420_v39 = vpop.xlane.xlu1 %419  ;;  %v380_v40 = vpop.xlane.xlu0 %379 }
  0xef   : > { %v421_v41 = vadd.f32 %v420_v39, %v403_v37  ;;  %v381_v42 = vadd.f32 %v380_v40, %v363_v38 }
  0xf1   : > { %422 = vst.msk [vmem:[%s331_s6] sm:$0x3] %vm336_vm0, %v421_v41  ;;  %382 = vst.msk [vmem:[%s327_s17] sm:$0x3] %vm336_vm0, %v381_v42 }
  0xf2 PF: > { %s22_s23 = sadd.s32 1, %s815_s23   ;;  %s1074_s18 = smov %s799_s19 }
  0xf3   : > { %p19_p9 = scmp.ge.s32.totalorder %s22_s23, 4   ;;  %s1075_s19 = smov %s803_s20 }
  0xf4   : > { %s1076_s20 = smov %s900_s30  ;;  %s1077_s21 = smov %s811_s22 }
  0xf5   : > { %s1078_s22 = smov %s1080_s25  ;;  %21 = sbr.rel (!%p19_p9) target bundleno = 6 (0x6), region = 121 }
  0xfc   :  { %484 = vsyncpa [#allocation3], 1 }
  0xfd   :  { %486 = vsyncpa [#allocation3 + $0x1], 1 }
  0xfe   :  { %487 = vsyncpa [#allocation5], 1 }
  0xff   :  { %489 = vsyncpa [#allocation5 + $0x1], 1 }

</bundles_post_ra>
